<compile_context>
chip_gen: v5e
topology: v5e:2x2
jax: 0.10.0
libtpu: 0.0.40
codegen_flags: <defaults>
</compile_context>

<pallas_src>
import jax
import jax.numpy as jnp
from jax import lax
from jax.experimental import pallas as pl
from jax.experimental.pallas import tpu as pltpu


# Padding value for logits: large enough that tanh(0.5 * pad) == -1.0 exactly
# in f32/bf16/f16, so sigmoid(pad) == 0.0 exactly and padded lanes contribute
# nothing to any of the three sums.
_PAD_LOGIT = -1.0e4


def _dice_partial_kernel(pred_ref, lab_ref, tp_out, sp_out, st_out,
                         tp_acc, sp_acc, st_acc):
    t = pl.program_id(2)

    @pl.when(t == 0)
    def _init():
        tp_acc[...] = jnp.zeros_like(tp_acc)
        sp_acc[...] = jnp.zeros_like(sp_acc)
        st_acc[...] = jnp.zeros_like(st_acc)

    logits = pred_ref[0]                        # (C, TILE), caller's dtype
    # sigmoid(x) = 0.5 * tanh(0.5 * x) + 0.5  -> a single EUP push per vreg
    # (vs exp + reciprocal).  Evaluate in the input dtype (bf16 EUP path on
    # v6e/v7x); accumulate in f32.
    half = jnp.asarray(0.5, logits.dtype)
    probs32 = jnp.tanh(logits * half).astype(jnp.float32) * 0.5 + 0.5

    labels = lab_ref[0]                         # (1, TILE) int32 (transposed labels)
    num_classes, tile = probs32.shape

    # one_hot(label)[c, p] == (label[p] == c): compare against a tiny (C, 1)
    # class-index iota and let the compare broadcast over lanes (avoids
    # materializing a (C, TILE) iota every grid step).
    c_idx = lax.broadcasted_iota(jnp.int32, (num_classes, 1), 0)
    onehot = labels == c_idx                    # (C, TILE) bool

    if num_classes % 8 == 0:
        # Free reshape (groups whole sublane tiles) + leading-axis sum = pure
        # VPU elementwise adds; no per-step cross-lane reduction.
        def channel_sum(x):
            return jnp.sum(x.reshape(num_classes // 8, 8, tile), axis=0)
    else:
        def channel_sum(x):
            return jnp.sum(x, axis=0, keepdims=True)

    tp_acc[...] += channel_sum(jnp.where(onehot, probs32, 0.0))   # sum(p * y)
    sp_acc[...] += channel_sum(probs32)                           # sum(p)
    # sum_c one_hot(label)[c, p] == (0 <= label[p] < C).  The upper-bound
    # guard makes out-of-range labels match jax.nn.one_hot (all-zero row);
    # 1/C the work of summing the one-hot itself.
    valid = jnp.logical_and(labels >= 0, labels < num_classes)
    st_acc[...] += valid.astype(jnp.float32)                      # sum(y)

    @pl.when(t == pl.num_programs(2) - 1)
    def _finish():
        # Single cross-lane reduction per (sample, chunk), outside the hot loop.
        tp_out[...] = jnp.full(tp_out.shape, jnp.sum(tp_acc[...]), jnp.float32)
        sp_out[...] = jnp.full(sp_out.shape, jnp.sum(sp_acc[...]), jnp.float32)
        st_out[...] = jnp.full(st_out.shape, jnp.sum(st_acc[...]), jnp.float32)


def _round_up(x, m):
    return ((x + m - 1) // m) * m


def _pick_tile(hw, channels, itemsize, max_block_bytes):
    """Tile size (multiple of 128) whose (C, tile) block fits the byte budget."""
    hw128 = _round_up(hw, 128)
    budget = max(128, (max_block_bytes // max(1, channels * itemsize)) // 128 * 128)
    if hw128 <= budget:
        return hw128                       # one tile covers the (padded) extent
    # Prefer an exact multiple-of-128 divisor of hw (no padding) near the budget.
    t = budget
    while t >= max(128, budget // 2):
        if hw % t == 0:
            return t
        t -= 128
    return budget                          # no nice divisor: wrapper pads hw up


def dice_loss(y_pred, y_true, *, epsilon=0.0001, num_encode=40,
              tile_hw=None, spatial_chunks=2, max_block_bytes=4 * 1024 * 1024):
    """Pallas TPU implementation of DiceLoss.forward.

    y_pred: (N, C=num_encode, H, W) logits.  Pass them in the dtype the
            producing layer emits (bf16 on v5e/v6e/v7x halves HBM traffic;
            do NOT cast in a wrapper - that adds a separate HBM pass).
    y_true: (N, H, W) int labels in [-1, num_encode - 1].
    spatial_chunks: outer "parallel" split of the spatial axis so v7x's two
            TensorCores are used even when N is 1 or odd.  No-op on v5e/v6e.
    max_block_bytes: per-step logits block budget.  4 MiB is safe everywhere;
            ~8 MiB shaves per-step overhead on v7x if VMEM allows.
    """
    N, C, H, W = y_pred.shape
    assert C == num_encode, "channel dim must equal num_encode"
    # The reference's transpose(1, -1) one-hot trick implicitly requires H == W.
    assert H == W
    HW = H * W
    itemsize = jnp.dtype(y_pred.dtype).itemsize

    if tile_hw is None:
        tile_hw = _pick_tile(HW, C, itemsize, max_block_bytes)
    assert tile_hw % 128 == 0

    # Spatial padding so every (chunk, tile) is full-size; padded logits give
    # prob exactly 0 and padded labels (-1) give one-hot exactly 0.
    num_tiles = -(-HW // tile_hw)
    num_chunks = max(1, int(spatial_chunks))
    num_chunks = min(num_chunks, num_tiles)
    num_tiles = _round_up(num_tiles, num_chunks)
    tiles_per_chunk = num_tiles // num_chunks
    padded_hw = num_tiles * tile_hw

    # Reproduce transpose(one_hot(...), 1, -1): indicator at (n, c, i, j) uses
    # label[n, j, i] -> pass spatially transposed labels.  This is one small
    # extra XLA pass over the labels (~1/C of the logit bytes); fuse the
    # transpose into the label producer if that matters for your pipeline.
    lab_t = jnp.swapaxes(y_true.astype(jnp.int32), 1, 2).reshape(N, 1, HW)
    pred3d = y_pred.reshape(N, C, HW)          # caller's dtype, no upcast

    pad = padded_hw - HW
    if pad:
        pred3d = jnp.pad(pred3d, ((0, 0), (0, 0), (0, pad)),
                         constant_values=_PAD_LOGIT)
        lab_t = jnp.pad(lab_t, ((0, 0), (0, 0), (0, pad)), constant_values=-1)

    acc_rows = 8 if C % 8 == 0 else 1

    out_shape = tuple(jax.ShapeDtypeStruct((N, num_chunks, 8, 128), jnp.float32)
                      for _ in range(3))
    out_spec = pl.BlockSpec((1, 1, 8, 128), lambda n, c, t: (n, c, 0, 0))

    # Explicit scoped-VMEM budget from the actual block sizes (+headroom) so
    # bf16 inputs / big tiles never hit v5e's 16 MiB default silently.
    pred_block = C * tile_hw * itemsize
    lab_block = tile_hw * 4
    acc_bytes = 3 * 8 * tile_hw * 4            # scratch rows pad to 8 sublanes
    out_bytes = 3 * 8 * 128 * 4
    vmem_limit = int((2 * pred_block + 2 * lab_block + acc_bytes + 2 * out_bytes)
                     * 1.3) + (2 << 20)
    vmem_limit = min(vmem_limit, 64 * 1024 * 1024)

    tp_p, sp_p, st_p = pl.pallas_call(
        _dice_partial_kernel,
        out_shape=out_shape,
        grid_spec=pltpu.PrefetchScalarGridSpec(
            num_scalar_prefetch=0,
            grid=(N, num_chunks, tiles_per_chunk),
            in_specs=[
                pl.BlockSpec((1, C, tile_hw),
                             lambda n, c, t: (n, 0, c * tiles_per_chunk + t)),
                pl.BlockSpec((1, 1, tile_hw),
                             lambda n, c, t: (n, 0, c * tiles_per_chunk + t)),
            ],
            out_specs=(out_spec, out_spec, out_spec),
            scratch_shapes=[
                pltpu.VMEM((acc_rows, tile_hw), jnp.float32),   # sum(p*y) partials
                pltpu.VMEM((acc_rows, tile_hw), jnp.float32),   # sum(p)   partials
                pltpu.VMEM((1, tile_hw), jnp.float32),          # sum(y)   partials
            ],
        ),
        compiler_params=pltpu.CompilerParams(
            dimension_semantics=("parallel", "parallel", "arbitrary"),
            vmem_limit_bytes=vmem_limit),
    )(pred3d, lab_t)

    # Tiny final reduction + Dice math in plain JAX (keeps both the batch and
    # chunk axes "parallel" inside the kernel).
    tp = jnp.sum(tp_p[:, :, 0, 0])
    sp = jnp.sum(sp_p[:, :, 0, 0])
    st = jnp.sum(st_p[:, :, 0, 0])
    intersection = tp + epsilon
    denom = sp + st + epsilon
    return 1.0 - 2.0 * intersection / denom


def _reference_loss(y_pred, y_true, *, epsilon=0.0001, num_encode=40):
    """Pure-JAX transliteration of the PyTorch forward (for verification)."""
    p = jax.nn.sigmoid(y_pred.astype(jnp.float32))
    oh = jax.nn.one_hot(y_true + 1, num_encode + 1, dtype=jnp.float32)  # (N,H,W,C+1)
    yt = jnp.swapaxes(oh, 1, -1)[:, 1:, :, :]                           # (N,C,W,H)
    intersection = jnp.sum(p * yt) + epsilon
    denom = jnp.sum(p) + jnp.sum(yt) + epsilon
    return 1.0 - 2.0 * intersection / denom


if __name__ == "__main__":
    num_encode = 40
    N, C, H, W = 2, num_encode, 24, 24

    key = jax.random.PRNGKey(0)
    k_pred, k_lab = jax.random.split(key)
    y_pred = jax.random.normal(k_pred, (N, C, H, W), dtype=jnp.float32)
    # labels in [-1, num_encode - 1], matching one_hot(y_true + 1, num_encode + 1)
    y_true = jax.random.randint(k_lab, (N, H, W), -1, num_encode, dtype=jnp.int32)

    # Force tile_hw=128 so the spatial-chunking, multi-tile accumulation AND
    # spatial-padding paths are all exercised at this toy size:
    # HW=576 -> 5 tiles -> padded to 6 tiles -> 2 chunks x 3 tiles per sample.
    loss = dice_loss(y_pred, y_true, num_encode=num_encode, tile_hw=128)
    loss = jax.block_until_ready(loss)

    ref = jax.block_until_ready(_reference_loss(y_pred, y_true, num_encode=num_encode))
    assert jnp.allclose(loss, ref, rtol=2e-5, atol=1e-5), (loss, ref)

    print("KERNEL_OK")
</pallas_src>

<mosaic_0001>
module attributes {stable_mosaic.version = 11 : i64} {
  func.func @_dice_partial_kernel(%arg0: i32, %arg1: i32, %arg2: i32, %arg3: memref<1x40x128xf32, #tpu.memory_space<vmem>>, %arg4: memref<1x1x128xi32, #tpu.memory_space<vmem>>, %arg5: memref<1x1x8x128xf32, #tpu.memory_space<vmem>>, %arg6: memref<1x1x8x128xf32, #tpu.memory_space<vmem>>, %arg7: memref<1x1x8x128xf32, #tpu.memory_space<vmem>>, %arg8: memref<8x128xf32, #tpu.memory_space<vmem>>, %arg9: memref<8x128xf32, #tpu.memory_space<vmem>>, %arg10: memref<1x128xf32, #tpu.memory_space<vmem>>) attributes {dimension_semantics = [#tpu.dimension_semantics<parallel>, #tpu.dimension_semantics<parallel>, #tpu.dimension_semantics<arbitrary>], iteration_bounds = array<i64: 2, 2, 3>, scalar_prefetch = 0 : i64, scratch_operands = 3 : i64, tpu.core_type = #tpu.core_type<tc>, window_params = [{transform_indices = @transform_0, window_bounds = array<i64: 1, 40, 128>}, {transform_indices = @transform_1, window_bounds = array<i64: 1, 1, 128>}, {transform_indices = @transform_2, window_bounds = array<i64: 1, 1, 8, 128>}, {transform_indices = @transform_3, window_bounds = array<i64: 1, 1, 8, 128>}, {transform_indices = @transform_4, window_bounds = array<i64: 1, 1, 8, 128>}]} {
    %c0_i32 = arith.constant 0 : i32
    %0 = arith.cmpi eq, %arg2, %c0_i32 : i32
    %1 = arith.extui %0 : i1 to i32
    %c0_i32_0 = arith.constant 0 : i32
    %2 = arith.cmpi ne, %1, %c0_i32_0 : i32
    scf.if %2 {
      %cst_25 = arith.constant 0.000000e+00 : f32
      %43 = vector.broadcast %cst_25 : f32 to vector<8x128xf32>
      %c0_26 = arith.constant 0 : index
      %c0_27 = arith.constant 0 : index
      %44 = vector.load %arg8[%c0_26, %c0_27] : memref<8x128xf32, #tpu.memory_space<vmem>>, vector<8x128xf32>
      tpu.vector_store %arg8[%c0_26, %c0_27], %43 {strides = array<i32>} : memref<8x128xf32, #tpu.memory_space<vmem>>, vector<8x128xf32>,
      %cst_28 = arith.constant 0.000000e+00 : f32
      %45 = vector.broadcast %cst_28 : f32 to vector<8x128xf32>
      %c0_29 = arith.constant 0 : index
      %c0_30 = arith.constant 0 : index
      %46 = vector.load %arg9[%c0_29, %c0_30] : memref<8x128xf32, #tpu.memory_space<vmem>>, vector<8x128xf32>
      tpu.vector_store %arg9[%c0_29, %c0_30], %45 {strides = array<i32>} : memref<8x128xf32, #tpu.memory_space<vmem>>, vector<8x128xf32>,
      %cst_31 = arith.constant 0.000000e+00 : f32
      %47 = vector.broadcast %cst_31 : f32 to vector<1x128xf32>
      %c0_32 = arith.constant 0 : index
      %c0_33 = arith.constant 0 : index
      %48 = vector.load %arg10[%c0_32, %c0_33] : memref<1x128xf32, #tpu.memory_space<vmem>>, vector<1x128xf32>
      tpu.vector_store %arg10[%c0_32, %c0_33], %47 {strides = array<i32>} : memref<1x128xf32, #tpu.memory_space<vmem>>, vector<1x128xf32>,
    } else {
    }
    %c0 = arith.constant 0 : index
    %c0_1 = arith.constant 0 : index
    %c0_2 = arith.constant 0 : index
    %3 = vector.load %arg3[%c0, %c0_1, %c0_2] : memref<1x40x128xf32, #tpu.memory_space<vmem>>, vector<1x40x128xf32>
    %4 = vector.shape_cast %3 : vector<1x40x128xf32> to vector<40x128xf32>
    %cst = arith.constant 5.000000e-01 : f32
    %5 = vector.broadcast %cst : f32 to vector<40x128xf32>
    %6 = arith.mulf %4, %5 : vector<40x128xf32>
    %7 = math.tanh %6 : vector<40x128xf32>
    %cst_3 = arith.constant 5.000000e-01 : f32
    %8 = vector.broadcast %cst_3 : f32 to vector<40x128xf32>
    %9 = arith.mulf %7, %8 : vector<40x128xf32>
    %cst_4 = arith.constant 5.000000e-01 : f32
    %10 = vector.broadcast %cst_4 : f32 to vector<40x128xf32>
    %11 = arith.addf %9, %10 : vector<40x128xf32>
    %c0_5 = arith.constant 0 : index
    %c0_6 = arith.constant 0 : index
    %c0_7 = arith.constant 0 : index
    %12 = vector.load %arg4[%c0_5, %c0_6, %c0_7] : memref<1x1x128xi32, #tpu.memory_space<vmem>>, vector<1x1x128xi32>
    %13 = vector.shape_cast %12 : vector<1x1x128xi32> to vector<1x128xi32>
    %14 = tpu.iota {dimensions = array<i32: 0>} : vector<40x1xi32>
    %15 = vector.broadcast %13 : vector<1x128xi32> to vector<40x128xi32>
    %16 = vector.broadcast %14 : vector<40x1xi32> to vector<40x128xi32>
    %17 = arith.cmpi eq, %15, %16 : vector<40x128xi32>
    %c0_8 = arith.constant 0 : index
    %c0_9 = arith.constant 0 : index
    %18 = vector.load %arg8[%c0_8, %c0_9] : memref<8x128xf32, #tpu.memory_space<vmem>>, vector<8x128xf32>
    %cst_10 = arith.constant 0.000000e+00 : f32
    %19 = vector.broadcast %cst_10 : f32 to vector<40x128xf32>
    %20 = arith.select %17, %11, %19 : vector<40x128xi1>, vector<40x128xf32>
    %21 = vector.shape_cast %20 : vector<40x128xf32> to vector<5x8x128xf32>
    %cst_11 = arith.constant dense<0.000000e+00> : vector<8x128xf32>
    %22 = vector.multi_reduction <add>, %21, %cst_11 [0] : vector<5x8x128xf32> to vector<8x128xf32>
    %23 = arith.addf %18, %22 : vector<8x128xf32>
    %c0_12 = arith.constant 0 : index
    %c0_13 = arith.constant 0 : index
    %24 = vector.load %arg8[%c0_12, %c0_13] : memref<8x128xf32, #tpu.memory_space<vmem>>, vector<8x128xf32>
    tpu.vector_store %arg8[%c0_12, %c0_13], %23 {strides = array<i32>} : memref<8x128xf32, #tpu.memory_space<vmem>>, vector<8x128xf32>,
    %c0_14 = arith.constant 0 : index
    %c0_15 = arith.constant 0 : index
    %25 = vector.load %arg9[%c0_14, %c0_15] : memref<8x128xf32, #tpu.memory_space<vmem>>, vector<8x128xf32>
    %26 = vector.shape_cast %11 : vector<40x128xf32> to vector<5x8x128xf32>
    %cst_16 = arith.constant dense<0.000000e+00> : vector<8x128xf32>
    %27 = vector.multi_reduction <add>, %26, %cst_16 [0] : vector<5x8x128xf32> to vector<8x128xf32>
    %28 = arith.addf %25, %27 : vector<8x128xf32>
    %c0_17 = arith.constant 0 : index
    %c0_18 = arith.constant 0 : index
    %29 = vector.load %arg9[%c0_17, %c0_18] : memref<8x128xf32, #tpu.memory_space<vmem>>, vector<8x128xf32>
    tpu.vector_store %arg9[%c0_17, %c0_18], %28 {strides = array<i32>} : memref<8x128xf32, #tpu.memory_space<vmem>>, vector<8x128xf32>,
    %c0_i32_19 = arith.constant 0 : i32
    %30 = vector.broadcast %c0_i32_19 : i32 to vector<1x128xi32>
    %31 = arith.cmpi sge, %13, %30 : vector<1x128xi32>
    %c40_i32 = arith.constant 40 : i32
    %32 = vector.broadcast %c40_i32 : i32 to vector<1x128xi32>
    %33 = arith.cmpi slt, %13, %32 : vector<1x128xi32>
    %34 = arith.andi %31, %33 : vector<1x128xi1>
    %c0_20 = arith.constant 0 : index
    %c0_21 = arith.constant 0 : index
    %35 = vector.load %arg10[%c0_20, %c0_21] : memref<1x128xf32, #tpu.memory_space<vmem>>, vector<1x128xf32>
    %36 = arith.extui %34 : vector<1x128xi1> to vector<1x128xi32>
    %37 = arith.sitofp %36 : vector<1x128xi32> to vector<1x128xf32>
    %38 = arith.addf %35, %37 : vector<1x128xf32>
    %c0_22 = arith.constant 0 : index
    %c0_23 = arith.constant 0 : index
    %39 = vector.load %arg10[%c0_22, %c0_23] : memref<1x128xf32, #tpu.memory_space<vmem>>, vector<1x128xf32>
    tpu.vector_store %arg10[%c0_22, %c0_23], %38 {strides = array<i32>} : memref<1x128xf32, #tpu.memory_space<vmem>>, vector<1x128xf32>,
    %c2_i32 = arith.constant 2 : i32
    %40 = arith.cmpi eq, %arg2, %c2_i32 : i32
    %41 = arith.extui %40 : i1 to i32
    %c0_i32_24 = arith.constant 0 : i32
    %42 = arith.cmpi ne, %41, %c0_i32_24 : i32
    scf.if %42 {
      %c0_25 = arith.constant 0 : index
      %c0_26 = arith.constant 0 : index
      %43 = vector.load %arg8[%c0_25, %c0_26] : memref<8x128xf32, #tpu.memory_space<vmem>>, vector<8x128xf32>
      %44 = vector.shape_cast %43 : vector<8x128xf32> to vector<1x8x128xf32>
      %cst_27 = arith.constant dense<0.000000e+00> : vector<1xf32>
      %45 = vector.multi_reduction <add>, %44, %cst_27 [1, 2] : vector<1x8x128xf32> to vector<1xf32>
      %46 = vector.shape_cast %45 : vector<1xf32> to vector<1x1x1xf32>
      %47 = vector.extract %46[0, 0, 0] : f32 from vector<1x1x1xf32>
      %48 = vector.broadcast %47 : f32 to vector<1x1x8x128xf32>
      %c0_28 = arith.constant 0 : index
      %c0_29 = arith.constant 0 : index
      %c0_30 = arith.constant 0 : index
      %c0_31 = arith.constant 0 : index
      %49 = vector.load %arg5[%c0_28, %c0_29, %c0_30, %c0_31] : memref<1x1x8x128xf32, #tpu.memory_space<vmem>>, vector<1x1x8x128xf32>
      tpu.vector_store %arg5[%c0_28, %c0_29, %c0_30, %c0_31], %48 {strides = array<i32>} : memref<1x1x8x128xf32, #tpu.memory_space<vmem>>, vector<1x1x8x128xf32>,
      %c0_32 = arith.constant 0 : index
      %c0_33 = arith.constant 0 : index
      %50 = vector.load %arg9[%c0_32, %c0_33] : memref<8x128xf32, #tpu.memory_space<vmem>>, vector<8x128xf32>
      %51 = vector.shape_cast %50 : vector<8x128xf32> to vector<1x8x128xf32>
      %cst_34 = arith.constant dense<0.000000e+00> : vector<1xf32>
      %52 = vector.multi_reduction <add>, %51, %cst_34 [1, 2] : vector<1x8x128xf32> to vector<1xf32>
      %53 = vector.shape_cast %52 : vector<1xf32> to vector<1x1x1xf32>
      %54 = vector.extract %53[0, 0, 0] : f32 from vector<1x1x1xf32>
      %55 = vector.broadcast %54 : f32 to vector<1x1x8x128xf32>
      %c0_35 = arith.constant 0 : index
      %c0_36 = arith.constant 0 : index
      %c0_37 = arith.constant 0 : index
      %c0_38 = arith.constant 0 : index
      %56 = vector.load %arg6[%c0_35, %c0_36, %c0_37, %c0_38] : memref<1x1x8x128xf32, #tpu.memory_space<vmem>>, vector<1x1x8x128xf32>
      tpu.vector_store %arg6[%c0_35, %c0_36, %c0_37, %c0_38], %55 {strides = array<i32>} : memref<1x1x8x128xf32, #tpu.memory_space<vmem>>, vector<1x1x8x128xf32>,
      %c0_39 = arith.constant 0 : index
      %c0_40 = arith.constant 0 : index
      %57 = vector.load %arg10[%c0_39, %c0_40] : memref<1x128xf32, #tpu.memory_space<vmem>>, vector<1x128xf32>
      %58 = vector.shape_cast %57 : vector<1x128xf32> to vector<1x1x128xf32>
      %cst_41 = arith.constant dense<0.000000e+00> : vector<1xf32>
      %59 = vector.multi_reduction <add>, %58, %cst_41 [1, 2] : vector<1x1x128xf32> to vector<1xf32>
      %60 = vector.shape_cast %59 : vector<1xf32> to vector<1x1x1xf32>
      %61 = vector.extract %60[0, 0, 0] : f32 from vector<1x1x1xf32>
      %62 = vector.broadcast %61 : f32 to vector<1x1x8x128xf32>
      %c0_42 = arith.constant 0 : index
      %c0_43 = arith.constant 0 : index
      %c0_44 = arith.constant 0 : index
      %c0_45 = arith.constant 0 : index
      %63 = vector.load %arg7[%c0_42, %c0_43, %c0_44, %c0_45] : memref<1x1x8x128xf32, #tpu.memory_space<vmem>>, vector<1x1x8x128xf32>
      tpu.vector_store %arg7[%c0_42, %c0_43, %c0_44, %c0_45], %62 {strides = array<i32>} : memref<1x1x8x128xf32, #tpu.memory_space<vmem>>, vector<1x1x8x128xf32>,
    } else {
    }
    return
  }
  func.func @transform_0(%arg0: i32, %arg1: i32, %arg2: i32) -> (i32, i32, i32) {
    %c3_i32 = arith.constant 3 : i32
    %0 = arith.muli %arg1, %c3_i32 : i32
    %1 = arith.addi %0, %arg2 : i32
    %c0_i32 = arith.constant 0 : i32
    %c0_i32_0 = arith.constant 0 : i32
    return %arg0, %c0_i32, %1 : i32, i32, i32
  }
  func.func @transform_1(%arg0: i32, %arg1: i32, %arg2: i32) -> (i32, i32, i32) {
    %c3_i32 = arith.constant 3 : i32
    %0 = arith.muli %arg1, %c3_i32 : i32
    %1 = arith.addi %0, %arg2 : i32
    %c0_i32 = arith.constant 0 : i32
    %c0_i32_0 = arith.constant 0 : i32
    return %arg0, %c0_i32, %1 : i32, i32, i32
  }
  func.func @transform_2(%arg0: i32, %arg1: i32, %arg2: i32) -> (i32, i32, i32, i32) {
    %c0_i32 = arith.constant 0 : i32
    %c0_i32_0 = arith.constant 0 : i32
    %c0_i32_1 = arith.constant 0 : i32
    return %arg0, %arg1, %c0_i32, %c0_i32_0 : i32, i32, i32, i32
  }
  func.func @transform_3(%arg0: i32, %arg1: i32, %arg2: i32) -> (i32, i32, i32, i32) {
    %c0_i32 = arith.constant 0 : i32
    %c0_i32_0 = arith.constant 0 : i32
    %c0_i32_1 = arith.constant 0 : i32
    return %arg0, %arg1, %c0_i32, %c0_i32_0 : i32, i32, i32, i32
  }
  func.func @transform_4(%arg0: i32, %arg1: i32, %arg2: i32) -> (i32, i32, i32, i32) {
    %c0_i32 = arith.constant 0 : i32
    %c0_i32_0 = arith.constant 0 : i32
    %c0_i32_1 = arith.constant 0 : i32
    return %arg0, %arg1, %c0_i32, %c0_i32_0 : i32, i32, i32, i32
  }
}

</mosaic_0001>

<bundles_post_ra>
// kernel: tpu_custom_call.1
= control target key start
LH: loop header
LB: loop body
LE: loop exit
PB: predicated region body
PF: predicated region fallthrough
CT: control target
= control target key end

     0   :  { %s1455_s0 = inlined_call_operand.hbm [shape: f32[2,40,768], index: 0, kind: input, shape index: {}]   ;;  %s1456_s1 = inlined_call_operand.hbm [shape: s32[2,1,768], index: 1, kind: input, shape index: {}]   ;;  %s1457_s2 = inlined_call_operand.hbm [shape: f32[2,2,8,128], index: 2, kind: output, shape index: {0}]   ;;  %s1458_s3 = inlined_call_operand.hbm [shape: f32[2,2,8,128], index: 3, kind: output, shape index: {1}]   ;;  %s1459_s4 = inlined_call_operand.hbm [shape: f32[2,2,8,128], index: 4, kind: output, shape index: {2}]  }
   0x1   :  { %1471 = sst [smem:[#allocation29_spill]] %s1457_s2 }
   0x2   :  { %1472 = sst [smem:[#allocation30_spill]] %s1459_s4 }
   0x3   :  { %10 = vsyncpa [#allocation6], 0 }
   0x4   :  { %12 = vsyncpa [#allocation6 + $0x1], 0 }
   0x5   :  { %13 = vsyncpa [#allocation9], 0 }
   0x6   :  { %15 = vsyncpa [#allocation9 + $0x1], 0 }
   0x7   :  { %16 = vsyncpa [#allocation7], 0 }
   0x8   :  { %18 = vsyncpa [#allocation7 + $0x1], 0 }
   0x9   :  { %19 = vsyncpa [#allocation12], 0 }
   0xa   :  { %21 = vsyncpa [#allocation12 + $0x1], 0  ;;  %s1152_s15 = smov 0   ;;  %s1154_s16 = smov 0  }
   0xb   :  { %s1156_s17 = smov 0   ;;  %s1158_s18 = smov 0  }
   0xc   :  { %s1160_s19 = smov 0   ;;  %s1162_s20 = smov 0  }
   0xd   :  { %s1164_s21 = smov 0   ;;  %s1166_s22 = smov 0  }
   0xe   :  { %s1168_s23 = smov 0   ;;  %s1170_s24 = smov 0  }
   0xf   :  { %s1172_s25 = smov 0   ;;  %s1174_s26 = smov 0  }
  0x10   :  { %s1176_s27 = smov 0  }
  0x11 LB: > { %1473 = sst [smem:[#allocation18_spill]] %s1072_s15  ;;  %s1218_s28 = sadd.s32 4294967295, %s1120_s27   ;;  %s1120_s27 = sphi %s1176_s27, %s27_s27   ;;  %s1116_s26 = sphi %s1174_s26, %s1510_s26   ;;  %s1112_s25 = sphi %s1172_s25, %s1503_s25   ;;  %s1108_s24 = sphi %s1170_s24, %s1502_s24   ;;  %s1104_s23 = sphi %s1168_s23, %s1509_s23   ;;  %s1100_s22 = sphi %s1166_s22, %s1501_s22   ;;  %s1096_s21 = sphi %s1164_s21, %s1500_s21   ;;  %s1092_s20 = sphi %s1162_s20, %s1499_s20   ;;  %s1088_s19 = sphi %s1160_s19, %s1508_s19   ;;  %s1084_s18 = sphi %s1158_s18, %s1507_s18   ;;  %s1080_s17 = sphi %s1156_s17, %s1497_s17   ;;  %s1076_s16 = sphi %s1154_s16, %s1506_s16   ;;  %s1072_s15 = sphi %s1152_s15, %s1505_s15  }
  0x12   : > { %1474 = sst [smem:[#allocation19_spill]] %s1080_s17  ;;  %s39_s30 = sadd.s32 1, %s1108_s24 }
  0x13   : > { %1475 = sst [smem:[#allocation20_spill]] %s1092_s20  ;;  %s42_s5 = sadd.s32 1, %s1112_s25 }
  0x14   : > { %1476 = sst [smem:[#allocation21_spill]] %s1108_s24  ;;  %p40_p0 = scmp.ge.s32.totalorder %s39_s30, 3 }
  0x15   : > { %1477 = sst [smem:[#allocation22_spill]] %s1112_s25  ;;  %s46_s6 = sadd.s32 1, %s1116_s26 }
  0x16   : > { %s50_s7 = smul.u32 3, %s1112_s25  ;;  %s59_s8 = sadd.s32 1, %s1092_s20 }
  0x17   : > { %s1512_s30 = smov (%p40_p0, %s39_s30), 0  ;;  %s1514_s5 = smov (!%p40_p0, %s42_s5), %s1112_s25 }
  0x18   : > { %1478 = sst [smem:[#allocation23_spill]] %s1512_s30  ;;  %s1230_s9 = sadd.s32 %s1108_s24, %s50_s7 }
  0x19   : > { %p66_p1 = scmp.ne.s32.totalorder %s1092_s20, %s1088_s19  ;;  %p44_p2 = scmp.ge.s32.totalorder %s1514_s5, 2 }
  0x1a   : > { %p67_p3 = scmp.eq.s32.totalorder %s1120_s27, 0  ;;  %p72_p4 = scmp.ne.s32.totalorder %s1088_s19, %s1084_s18 }
  0x1b   : > { %p73_p5 = scmp.eq.s32.totalorder %s1218_s28, 0  ;;  %s1516_s5 = smov (%p44_p2, %s1514_s5), 0 }
  0x1c   : > { %1479 = sst [smem:[#allocation24_spill]] %s1516_s5  ;;  %s1518_s6 = smov (!%p44_p2, %s46_s6), %s1116_s26 }
  0x1d   : > { %s52_s10 = smul.u32 3, %s1516_s5  ;;  %p1242_p6 = por %p67_p3, %p66_p1 }
  0x1e   : > { %p48_p7 = scmp.ge.s32.totalorder %s1518_s6, 2  ;;  %p1246_p8 = por %p73_p5, %p72_p4 }
  0x1f   : > { %s53_s13 = sadd.s32 %s52_s10, %s1512_s30  ;;  %s115_s14 = ssub.s32 %s1112_s25, %s1516_s5 }
  0x20   : > { %s1520_s6 = smov (%p48_p7, %s1518_s6), 0  ;;  %s55_s18 = ssub.s32 %s1230_s9, %s53_s13 }
  0x21   : > { %1482 = sst [smem:[#allocation25_spill]] %s1520_s6  ;;  %s119_s7 = sadd.s32 1, %s1080_s17 }
  0x22   : > { %s54_s29 = ssub.s32 %s1116_s26, %s1520_s6  ;;  %p129_p9 = scmp.ne.s32.totalorder %s1080_s17, %s1076_s16 }
  0x23   : > { %s56_s24 = sor.u32 %s55_s18, %s54_s29  ;;  %s116_s4 = sor.u32 %s115_s14, %s54_s29 }
  0x24   : > { %p57_p10 = scmp.eq.s32.totalorder %s56_s24, 0  ;;  %p117_p11 = scmp.eq.s32.totalorder %s116_s4, 0 }
  0x25   : > { %p130_p12 = scmp.eq.s32.totalorder %s1218_s28, 11  ;;  %p135_p13 = scmp.ne.s32.totalorder %s1076_s16, %s1072_s15 }
  0x26   : > { %s1265_s10 = scalar_select %p57_p10, %s1092_s20, %s59_s8  }
  0x27   : > { %s1268_s5 = scalar_select %p117_p11, %s1080_s17, %s119_s7  }
  0x28   : > { %1483 = sst [smem:[#allocation26_spill]] %s1265_s10  ;;  %p1270_p0 = por %p130_p12, %p129_p9 }
  0x29   : > { %1484 = sst [smem:[#allocation27_spill]] %s1268_s5  ;;  %s1486_s13 = sadd.s32 4294967294, %s1120_s27  }
  0x2a   : > { %p136_p1 = scmp.eq.s32.totalorder %s1486_s13, 11  ;;  %p736_p2 = scmp.lt.s32.totalorder %s1120_s27, 12 }
  0x2b   : > { %s1282_s29 = sand.u32 1, %s1092_s20   ;;  %s700_s24 = smul.u32 30, %s1116_s26 }
  0x2c   : > { %p1277_p3 = por %p136_p1, %p135_p13  ;;  %s699_s4 = smul.u32 40, %s1282_s29 }
  0x2d   : > { %p1288_p4 = pnand %p736_p2, %p1242_p6  ;;  %s222_s14 = sadd.s32 %s700_s24, %s1230_s9 }
  0x2e   : > { %s1487_s6 = scalar_select %p1277_p3, 1, 0 }
  0x2f   : > { %s216_s18 = scalar_lea.vmem [#allocation5], %s699_s4  ;;  %s680_s13 = sshll.u32 %s222_s14, 3 }
  0x30   : > { %1488 = sst [smem:[#allocation28_spill]] %s1487_s6  ;;  %s227_s7 = sshll.u32 %s216_s18, 4  ;;  %s228_s7 = int_to_ptr.vmem [resolvable:$true] %s227_s7 }
  0x31   : > { %s224_s20 = scalar_lea.hbm %s1455_s0, %s680_s13  ;;  %s213_s11 = scalar_lea.sflag [#allocation6], %s1282_s29 }
  0x32   : > { %s225_s5 = sshll.u32 %s224_s20, 4  ;;  %s1122_s17 = smov 768   ;;  %s226_s5 = int_to_ptr.hbm [resolvable:$true] %s225_s5 }
  0x33   : > { %s1123_s6 = smov 128   ;;  %s1124_s15 = smov 8  }
  0x34   : > { %722 = dma.hbm_to_vmem [thread:$0]  (!%p1288_p4), %s226_s5, 640, %s228_s7, %s213_s11, %s1122_s17, %s1123_s6, %s1124_s15  }
  0x35   : > { %p681_p5 = scmp.ge.s32.totalorder %s1120_s27, 1  ;;  %p256_p6 = scmp.lt.s32.totalorder %s1120_s27, 13 }
  0x36   : > { %s701_s4 = smul.u32 6, %s1116_s26  ;;  %s240_s24 = scalar_lea.vmem [#allocation8], %s1282_s29 }
  0x37   : > { %p257_p7 = pnand %p681_p5, %p256_p6  ;;  %s251_s14 = sshll.u32 %s240_s24, 4  ;;  %s252_s14 = int_to_ptr.vmem [resolvable:$true] %s251_s14 }
  0x38   : > { %s246_s18 = sadd.s32 %s701_s4, %s1230_s9  ;;  %s238_s13 = scalar_lea.sflag [#allocation9], %s1282_s29 }
  0x39   : > { %s247_s20 = scalar_lea.hbm %s1456_s1, %s246_s18  ;;  %260 = sbr.rel (%p257_p7) target bundleno = 351 (0x15f), region = 28 }
  0x3a   : > { %s249_s10 = sshll.u32 %s247_s20, 4  ;;  %s1311_s15 = sand.u32 (!%p257_p7), 1, %s1088_s19   ;;  %s250_s10 = int_to_ptr.hbm [resolvable:$true] %s249_s10 }
  0x3b   : > { %725 = dma.hbm_to_vmem [thread:$0]  (!%p1288_p4), %s250_s10, 16, %s252_s14, %s238_s13  }
  0x3c   : > { %s702_s17 = smul.u32 (!%p257_p7), 40, %s1311_s15  ;;  %s263_s5 = scalar_lea.sflag (!%p257_p7), [#allocation6], %s1311_s15 }
  0x3e   : > { %s266_s6 = scalar_lea.vmem [#allocation5], %s702_s17 }
  0x3f   : > { %1055 = dma.done.wait (%p1246_p8), %s263_s5, 640  }
  0x40   : > { %1057 = vsyncadd (%p1246_p8), %s263_s5, 4294966656  ;;  %s273_s2 = scalar_lea.sflag [#allocation9], %s1311_s15  ;;  %s275_s9 = scalar_lea.vmem [#allocation8], %s1311_s15 }
  0x41   : > { %1059 = dma.done.wait (%p1246_p8), %s273_s2, 16  }
  0x42   : > { %1061 = vsyncadd (%p1246_p8), %s273_s2, 4294967280  ;;  %s298_s29 = sand.u32 1, %s1076_s16   ;;  %p685_p9 = scmp.ne.s32.totalorder %s1096_s21, 0 }
  0x43   : > { %s1328_s8 = sshll.u32 %s298_s29, 3 }
  0x44   : > { %s300_s7 = scalar_lea.vmem [#allocation10], %s1328_s8  ;;  %s307_s11 = scalar_lea.vmem [#allocation11], %s1328_s8 }
  0x45   : > { %s314_s4 = scalar_lea.vmem [#allocation13], %s1328_s8  ;;  %322 = sbr.rel (%p685_p9) target bundleno = 78 (0x4e), region = 40 }
  0x4a   : > { %v1125_v0 = vmov 0.0  }
  0x4b   : > { %323 = vst [vmem:[#allocation2] sm:$0xff] %v1125_v0 }
  0x4c   : > { %324 = vst [vmem:[#allocation3] sm:$0xff] %v1125_v0 }
  0x4d   : > { %325 = vst [vmem:[#allocation4] sm:$0x1] %v1125_v0 }
  0x4e PF: > { %v326_v1 = vld [vmem:[%s266_s6] sm:$0xff]  ;;  %v327_v2 = vld [vmem:[%s266_s6 + $0x8] sm:$0xff]  ;;  %v328_v3 = vld [vmem:[%s266_s6 + $0x10] sm:$0xff]  ;;  %v352_v4 = vlaneseq  ;;  %v1126_v15 = vmov 0.0   ;;  %p687_p8 = scmp.ne.s32.totalorder %s1096_s21, 2 }
  0x4f   : > { %v329_v5 = vld [vmem:[%s266_s6 + $0x18] sm:$0xff]  ;;  %v330_v6 = vld [vmem:[%s266_s6 + $0x20] sm:$0xff]  ;;  %v331_v7 = vmul.f32 0.5, %v326_v1  ;;  %v332_v8 = vmul.f32 0.5, %v327_v2  ;;  %v333_v9 = vmul.f32 0.5, %v328_v3 }
  0x50   : > { %v334_v10 = vmul.f32 0.5, %v329_v5  ;;  %v351_v11 = vld [vmem:[%s275_s9] sm:$0x1]  ;;  %v335_v12 = vmul.f32 0.5, %v330_v6  ;;  %v353_v13 = vshrl.u32 %v352_v4, 7 }
  0x51   : > { %848 = vtanh.f32 %v331_v7  ;;  %vm383_vm0 = vcmp.ge.s32.totalorder %v351_v11, 0  ;;  %vm384_vm1 = vcmp.lt.s32.totalorder %v351_v11, 40  ;;  %v847_v17 = vld [vmem:[%s275_s9] ss:$0 sm:$0xff] }
  0x52   : > { %850 = vtanh.f32 %v332_v8  ;;  %vm385_vm2 = vmand %vm383_vm0, %vm384_vm1  ;;  %v354_v19 = vadd.s32 8, %v353_v13  ;;  %v355_v21 = vadd.s32 16, %v353_v13  ;;  %v356_v24 = vadd.s32 24, %v353_v13  ;;  %v364_v50 = vld [vmem:[#allocation2] sm:$0xff] }
  0x53   : > { %852 = vtanh.f32 %v333_v9  ;;  %v686_v16 = vsel %vm385_vm2, 1.0, %v1126_v15  ;;  %vm359_vm3 = vcmp.eq.s32.totalorder %v847_v17, %v353_v13  ;;  %v357_v30 = vadd.s32 32, %v353_v13  ;;  %v376_v49 = vld [vmem:[#allocation3] sm:$0xff] }
  0x54   : > { %v386_v14 = vld [vmem:[#allocation4] sm:$0x1]  ;;  %854 = vtanh.f32 %v334_v10  ;;  %vm360_vm4 = vcmp.eq.s32.totalorder %v847_v17, %v354_v19  ;;  %vm361_vm5 = vcmp.eq.s32.totalorder %v847_v17, %v355_v21  ;;  %vm362_vm6 = vcmp.eq.s32.totalorder %v847_v17, %v356_v24 }
  0x55   : > { %856 = vtanh.f32 %v335_v12  ;;  %v389_v18 = vadd.f32 %v686_v16, %v386_v14  ;;  %vm363_vm7 = vcmp.eq.s32.totalorder %v847_v17, %v357_v30 }
  0x57   : > { %v849_v20 = vpop.eup %848  ;;  %390 = vst [vmem:[#allocation4] sm:$0x1] %v389_v18 }
  0x58   : > { %v851_v22 = vpop.eup %850  ;;  %v341_v23 = vmul.f32 0.5, %v849_v20 }
  0x59   : > { %v853_v25 = vpop.eup %852  ;;  %v342_v26 = vmul.f32 0.5, %v851_v22 }
  0x5a   : > { %v855_v27 = vpop.eup %854  ;;  %v343_v28 = vmul.f32 0.5, %v853_v25  ;;  %v346_v29 = vadd.f32 0.5, %v341_v23 }
  0x5b   : > { %v857_v31 = vpop.eup %856  ;;  %v344_v32 = vmul.f32 0.5, %v855_v27  ;;  %v347_v33 = vadd.f32 0.5, %v342_v26 }
  0x5c   : > { %v345_v34 = vmul.f32 0.5, %v857_v31  ;;  %v348_v35 = vadd.f32 0.5, %v343_v28  ;;  %v365_v36 = vsel %vm359_vm3, %v346_v29, 0.0 }
  0x5d   : > { %v349_v37 = vadd.f32 0.5, %v344_v32  ;;  %v366_v38 = vsel %vm360_vm4, %v347_v33, 0.0  ;;  %v377_v39 = vadd.f32 %v347_v33, %v346_v29 }
  0x5e   : > { %v350_v40 = vadd.f32 0.5, %v345_v34  ;;  %v367_v41 = vsel %vm361_vm5, %v348_v35, 0.0  ;;  %v370_v42 = vadd.f32 %v366_v38, %v365_v36 }
  0x5f   : > { %v368_v43 = vsel %vm362_vm6, %v349_v37, 0.0  ;;  %v378_v44 = vadd.f32 %v377_v39, %v348_v35 }
  0x60   : > { %v371_v45 = vadd.f32 %v370_v42, %v367_v41  ;;  %v369_v46 = vsel %vm363_vm7, %v350_v40, 0.0 }
  0x61   : > { %v379_v47 = vadd.f32 %v378_v44, %v349_v37 }
  0x62   : > { %v372_v48 = vadd.f32 %v371_v45, %v368_v43 }
  0x63   : > { %v380_v51 = vadd.f32 %v379_v47, %v350_v40 }
  0x64   : > { %v373_v52 = vadd.f32 %v372_v48, %v369_v46  ;;  %394 = sbr.rel (%p687_p8) target bundleno = 301 (0x12d), region = 44 }
  0x65   : > { %v381_v53 = vadd.f32 %v380_v51, %v376_v49 }
  0x66   : > { %v374_v54 = vadd.f32 %v373_v52, %v364_v50 }
  0x67   : > { %382 = vst [vmem:[#allocation3] sm:$0xff] %v381_v53 }
  0x68   : > { %375 = vst [vmem:[#allocation2] sm:$0xff] %v374_v54 }
  0x69   : > { %v419_v56 = vld [vmem:[#allocation4] sm:$0x1]  ;;  %vm420_vm8 = vcmask 1040384  }
  0x6a   : > { %v421_v57 = vsel %vm420_vm8, %v419_v56, 0.0 }
  0x6b   : > { %422 = vadd.xlane.f32.xlu1 %v421_v57 }
  0x6e   : > { %v407_v58 = vld [vmem:[#allocation3] sm:$0xff] }
  0x6f   : > { %v395_v55 = vld [vmem:[#allocation2] sm:$0xff] }
  0x70   : > { %396 = vadd.xlane.f32.xlu0 %v395_v55 }
  0x78   : > { %408 = vadd.xlane.f32.xlu0 %v407_v58 }
  0xde   : > { %v423_v61 = vpop.xlane.xlu1 %422 }
  0xdf   : > { %v424_v62 = vrot.slane %v423_v61, 4 }
  0xe1   : > { %v425_v0 = vadd.f32 %v424_v62, %v423_v61 }
  0xe3   : > { %v397_v59 = vpop.xlane.xlu0 %396  ;;  %v426_v3 = vrot.slane %v425_v0, 2 }
  0xe4   : > { %v398_v60 = vrot.slane %v397_v59, 4 }
  0xe5   : > { %v427_v9 = vadd.f32 %v426_v3, %v425_v0 }
  0xe6   : > { %v399_v63 = vadd.f32 %v398_v60, %v397_v59 }
  0xe7   : > { %v428_v12 = vrot.slane %v427_v9, 1 }
  0xe8   : > { %v400_v1 = vrot.slane %v399_v63, 2 }
  0xe9   : > { %v429_v15 = vadd.f32 %v428_v12, %v427_v9 }
  0xea   : > { %v401_v2 = vadd.f32 %v400_v1, %v399_v63 }
  0xeb   : > { %v409_v4 = vpop.xlane.xlu0 %408 }
  0xec   : > { %v410_v5 = vrot.slane %v409_v4, 4  ;;  %v402_v6 = vrot.slane %v401_v2, 1 }
  0xee   : > { %v411_v7 = vadd.f32 %v410_v5, %v409_v4  ;;  %v403_v8 = vadd.f32 %v402_v6, %v401_v2 }
  0xf0   : > { %v412_v10 = vrot.slane %v411_v7, 2  ;;  %703 = vpush %v403_v8 }
  0xf2   : > { %v413_v11 = vadd.f32 %v412_v10, %v411_v7 }
  0xf4   : > { %v414_v13 = vrot.slane %v413_v11, 1 }
  0xf6   : > { %v415_v14 = vadd.f32 %v414_v13, %v413_v11 }
  0xf8   : > { %705 = vpush %v415_v14 }
  0xf9   : > { %707 = vpush %v429_v15 }
 0x121   : > { %s704_s21 = spop %703 }
 0x122   : > { %v405_v16 = vstv %s704_s21 }
 0x123   : > { %406 = vst [vmem:[%s300_s7] sm:$0xff] %v405_v16 }
 0x129   : > { %s706_s12 = spop %705 }
 0x12a   : > { %v417_v17 = vstv %s706_s12  ;;  %s708_s24 = spop %707 }
 0x12b   : > { %418 = vst [vmem:[%s307_s11] sm:$0xff] %v417_v17  ;;  %v431_v18 = vstv %s708_s24 }
 0x12c   : > { %432 = vst [vmem:[%s314_s4] sm:$0xff] %v431_v18 }
 0x12d PF: > { %s438_s14 = sand.u32 1, %s1218_s28   ;;  %s691_s18 = sshll.u32 %s1104_s23, 1 }
 0x12e   : > { %s454_s25 = sadd.s32 %s1100_s22, %s691_s18  ;;  %s474_s10 = sshll.u32 %s307_s11, 4  ;;  %s475_s10 = int_to_ptr.vmem [resolvable:$true] %s474_s10 }
 0x12f   : > { %s1348_s20 = sshll.u32 %s454_s25, 3  ;;  %s1490_s9 = sld [smem:[#allocation29_spill]] }
 0x130   : > { %s472_s17 = scalar_lea.hbm %s1458_s3, %s1348_s20  ;;  %s1360_s28 = scalar_lea.sflag [#allocation12], %s438_s14 }
 0x131   : > { %s476_s5 = sshll.u32 %s472_s17, 4  ;;  %s938_s24 = scalar_lea.hbm %s1458_s3, 32  ;;  %s477_s5 = int_to_ptr.hbm [resolvable:$true] %s476_s5 }
 0x132   : > { %s932_s22 = sshra.s32 %s477_s5, 4  ;;  %s933_s22 = int_to_ptr.hbm [resolvable:$true] %s932_s22 }
 0x133   : > { %s934_s23 = scalar_lea.hbm %s933_s22, 8  ;;  %p939_p13 = scmp.lt.s32.totalorder %s933_s22, %s1458_s3 }
 0x134   : > { %p935_p10 = scmp.ne.s32.totalorder %s933_s22, %s934_s23  ;;  %p940_p1 = scmp.lt.s32.totalorder %s938_s24, %s934_s23 }
 0x135   : > { %s456_s21 = scalar_lea.hbm %s1490_s9, %s1348_s20 }
 0x136   : > { %p936_p11 = pnand %p935_p10, %p1270_p0  ;;  %p941_p2 = por %p940_p1, %p939_p13 }
 0x138   : > { %p937_p12 = pneg %p936_p11 }
 0x13a   : > { %p942_p4 = pnand %p941_p2, %p937_p12 }
 0x13c   : > { %945 = shalt.err (!%p942_p4)
}
 0x13d   : > { %714 = dma.vmem_to_hbm [thread:$0]  (%p1270_p0), %s475_s10, 128, %s477_s5, %s1360_s28  }
 0x13e   : > { %s458_s14 = sshll.u32 %s300_s7, 4  ;;  %s460_s13 = sshll.u32 %s456_s21, 4  ;;  %s459_s14 = int_to_ptr.vmem [resolvable:$true] %s458_s14  ;;  %s461_s13 = int_to_ptr.hbm [resolvable:$true] %s460_s13 }
 0x13f   : > { %s434_s15 = scalar_lea.sflag [#allocation7], %s298_s29  ;;  %s960_s17 = sshra.s32 %s461_s13, 4  ;;  %s961_s17 = int_to_ptr.hbm [resolvable:$true] %s960_s17 }
 0x140   : > { %s962_s6 = scalar_lea.hbm %s961_s17, 8  ;;  %s966_s23 = scalar_lea.hbm %s1490_s9, 32 }
 0x141   : > { %p963_p5 = scmp.ne.s32.totalorder %s961_s17, %s962_s6  ;;  %p967_p9 = scmp.lt.s32.totalorder %s961_s17, %s1490_s9 }
 0x142   : > { %p968_p8 = scmp.lt.s32.totalorder %s966_s23, %s962_s6 }
 0x143   : > { %p964_p6 = pnand %p963_p5, %p1270_p0 }
 0x144   : > { %p969_p10 = por %p968_p8, %p967_p9 }
 0x145   : > { %p965_p7 = pneg %p964_p6 }
 0x147   : > { %p970_p11 = pnand %p969_p10, %p965_p7 }
 0x149   : > { %973 = shalt.err (!%p970_p11)
}
 0x14a   : > { %713 = dma.vmem_to_hbm [thread:$0]  (%p1270_p0), %s459_s14, 128, %s461_s13, %s434_s15  }
 0x14b   : > { %s1491_s5 = sld [smem:[#allocation30_spill]]  ;;  %s490_s12 = sshll.u32 %s314_s4, 4  ;;  %s491_s12 = int_to_ptr.vmem [resolvable:$true] %s490_s12 }
 0x151   : > { %s488_s21 = scalar_lea.hbm %s1491_s5, %s1348_s20  ;;  %s994_s14 = scalar_lea.hbm %s1491_s5, 32 }
 0x152   : > { %s492_s24 = sshll.u32 %s488_s21, 4  ;;  %s493_s24 = int_to_ptr.hbm [resolvable:$true] %s492_s24 }
 0x153   : > { %s988_s18 = sshra.s32 %s493_s24, 4  ;;  %s989_s18 = int_to_ptr.hbm [resolvable:$true] %s988_s18 }
 0x154   : > { %s990_s25 = scalar_lea.hbm %s989_s18, 8  ;;  %p995_p2 = scmp.lt.s32.totalorder %s989_s18, %s1491_s5 }
 0x155   : > { %p991_p12 = scmp.ne.s32.totalorder %s989_s18, %s990_s25  ;;  %p996_p4 = scmp.lt.s32.totalorder %s994_s14, %s990_s25 }
 0x157   : > { %p992_p13 = pnand %p991_p12, %p1270_p0  ;;  %p997_p5 = por %p996_p4, %p995_p2 }
 0x159   : > { %p993_p1 = pneg %p992_p13 }
 0x15b   : > { %p998_p6 = pnand %p997_p5, %p993_p1 }
 0x15d   : > { %1001 = shalt.err (!%p998_p6)
}
 0x15e   : > { %715 = dma.vmem_to_hbm [thread:$0]  (%p1270_p0), %s491_s12, 128, %s493_s24, %s1360_s28  }
 0x15f PF: > { %s1492_s8 = sld [smem:[#allocation18_spill]]  ;;  %p737_p7 = scmp.ge.s32.totalorder %s1120_s27, 2 }
 0x161   : > { %p727_p9 = pnand %p737_p7, %p1277_p3 }
 0x163   : > { %p728_p8 = pneg %p727_p9 }
 0x165   : > { %s504_s20 = sand.u32 1, %s1492_s8  }
 0x166   : > { %s505_s2 = scalar_lea.sflag [#allocation7], %s504_s20 }
 0x167   : > { %1063 = dma.done.wait (%p728_p8), %s505_s2, 128  }
 0x168   : > { %1065 = vsyncadd (%p728_p8), %s505_s2, 4294967168  ;;  %s1494_s22 = sadd.s32 4294967294, %s1120_s27  }
 0x169   : > { %s514_s23 = sand.u32 1, %s1494_s22  }
 0x16a   : > { %s515_s11 = scalar_lea.sflag [#allocation12], %s514_s23 }
 0x16b   : > { %1067 = dma.done.wait (%p728_p8), %s515_s11, 256  }
 0x16c   : > { %1069 = vsyncadd (%p728_p8), %s515_s11, 4294967040  ;;  %s27_s27 = sadd.s32 1, %s1120_s27   ;;  %s1496_s28 = sld [smem:[#allocation19_spill]] }
 0x16d   : > { %p1411_p0 = scmp.ge.s32.totalorder %s27_s27, 14   ;;  %s1497_s17 = sld [smem:[#allocation27_spill]] }
 0x16e   : > { %s1498_s10 = sld [smem:[#allocation20_spill]]  ;;  %s1505_s15 = smov %s1076_s16 }
 0x16f   : > { %s1499_s20 = sld [smem:[#allocation26_spill]]  ;;  %s1507_s18 = smov %s1088_s19 }
 0x170   : > { %s1500_s21 = sld [smem:[#allocation21_spill]]  ;;  %s1509_s23 = smov %s1116_s26 }
 0x171   : > { %s1501_s22 = sld [smem:[#allocation22_spill]] }
 0x172   : > { %s1502_s24 = sld [smem:[#allocation23_spill]]  ;;  %s1506_s16 = smov %s1496_s28 }
 0x173   : > { %s1503_s25 = sld [smem:[#allocation24_spill]] }
 0x174   : > { %s1504_s29 = sld [smem:[#allocation25_spill]]  ;;  %s1508_s19 = smov %s1498_s10 }
 0x176   :  { %26 = sbr.rel (!%p1411_p0) target bundleno = 17 (0x11), region = 126 }
 0x17a   : > { %s1510_s26 = smov %s1504_s29 }
 0x17b   :  { %531 = vsyncpa [#allocation6], 1 }
 0x17c   :  { %533 = vsyncpa [#allocation6 + $0x1], 1 }
 0x17d   :  { %534 = vsyncpa [#allocation9], 1 }
 0x17e   :  { %536 = vsyncpa [#allocation9 + $0x1], 1 }
 0x17f   :  { %537 = vsyncpa [#allocation7], 1 }
 0x180   :  { %539 = vsyncpa [#allocation7 + $0x1], 1 }
 0x181   :  { %540 = vsyncpa [#allocation12], 1 }
 0x182   :  { %542 = vsyncpa [#allocation12 + $0x1], 1 }

</bundles_post_ra>
